<compile_context>
chip_gen: v7x
topology: tpu7x:2x2x1
jax: 0.10.0
libtpu: 0.0.40
codegen_flags: <defaults>
</compile_context>

<pallas_src>
import functools

import jax
import jax.numpy as jnp
from jax import lax
from jax.experimental import pallas as pl
from jax.experimental.pallas import tpu as pltpu

# ---- small config consistent with a Llama decoder layer ----
SEQ = 16
HIDDEN = 128
N_HEADS = 4
N_KV_HEADS = 2
HEAD_DIM = HIDDEN // N_HEADS          # 32
Q_SIZE = N_HEADS * HEAD_DIM           # 128
KV_SIZE = N_KV_HEADS * HEAD_DIM       # 64
QKV_SIZE = Q_SIZE + 2 * KV_SIZE       # 256
ROT_SIZE = Q_SIZE + KV_SIZE           # 192 (rotated q+k columns only)
INTERMEDIATE = 256
RMS_EPS = 1e-6
ROPE_THETA = 1000000.0
DTYPE = jnp.float32

_VMEM = pl.BlockSpec(memory_space=pltpu.MemorySpace.VMEM)


# ----------------------------------------------------------------------------
# Fused decoder-layer kernel
# ----------------------------------------------------------------------------
def _rms(x, w, eps):
    var = jnp.mean(x * x, axis=-1, keepdims=True)
    return x * lax.rsqrt(var + eps) * w


def _decoder_layer_kernel(*refs, has_residual, n_heads, n_kv_heads, head_dim,
                          q_size, kv_size, inter, eps):
    if has_residual:
        (x_ref, res_ref, w_in_ref, w_post_ref, wbig_ref, wo_ref, wgu_ref,
         wd_ref, cos_ref, sin_ref, out_ref, res_out_ref) = refs
    else:
        (x_ref, w_in_ref, w_post_ref, wbig_ref, wo_ref, wgu_ref,
         wd_ref, cos_ref, sin_ref, out_ref, res_out_ref) = refs
        res_ref = None

    f32 = jnp.float32
    bf16 = jnp.bfloat16
    T = x_ref.shape[0]

    # ---- (optional add) + input RMSNorm; residual stays on-chip ----
    if has_residual:
        s1 = x_ref[...].astype(f32) + res_ref[...].astype(f32)
    else:
        s1 = x_ref[...].astype(f32)
    h1 = _rms(s1, w_in_ref[...].astype(f32), eps)

    # ---- qkv projection widened with the rotate-half permutation columns ----
    # wbig columns: [Wq*scale | Wk | Wv | (Wq*scale)@R | Wk@R]
    big = jnp.dot(h1.astype(bf16), wbig_ref[...], preferred_element_type=f32)
    qk_lin = big[:, :q_size + kv_size]                       # (T, q+kv) f32
    v_all = big[:, q_size + kv_size:q_size + 2 * kv_size]    # (T, kv) f32
    qk_rot = big[:, q_size + 2 * kv_size:]                   # (T, q+kv) f32
    # RoPE (q-scale already folded into weights) = one full-width FMA.
    roped = qk_lin * cos_ref[...] + qk_rot * sin_ref[...]
    q_all = roped[:, :q_size]
    k_all = roped[:, q_size:]

    # causal mask (single-sequence prefill semantics); keep masking in f32.
    row = lax.broadcasted_iota(jnp.int32, (T, T), 0)
    col = lax.broadcasted_iota(jnp.int32, (T, T), 1)
    causal = row >= col

    group = n_heads // n_kv_heads
    head_outs = []
    # TODO(synk): at real head counts batch heads in one dot_general / grid
    # axis instead of a static Python unroll (vreg pressure / code size).
    for h in range(n_heads):
        kvh = h // group
        qh = q_all[:, h * head_dim:(h + 1) * head_dim].astype(bf16)
        kh = k_all[:, kvh * head_dim:(kvh + 1) * head_dim].astype(bf16)
        vh = v_all[:, kvh * head_dim:(kvh + 1) * head_dim].astype(bf16)

        # bf16 operands, f32 accumulation on the MXU.
        s = jnp.dot(qh, kh.T, preferred_element_type=f32)     # (T, T) f32
        s = jnp.where(causal, s, -1e30)
        m = jnp.max(s, axis=-1, keepdims=True)
        e = jnp.exp(s - m)
        p = e * pl.reciprocal(jnp.sum(e, axis=-1, keepdims=True), approx=True)
        oh = jnp.dot(p.astype(bf16), vh, preferred_element_type=f32)
        head_outs.append(oh.astype(bf16))

    # single full-depth output projection (K = q_size) instead of per-head
    # K=32 partials + VPU accumulation.
    o_all = jnp.concatenate(head_outs, axis=-1)               # (T, q_size) bf16
    attn = jnp.dot(o_all, wo_ref[...], preferred_element_type=f32)

    # ---- post-attention add + RMSNorm ----
    s2 = attn + s1
    res_out_ref[...] = s2.astype(res_out_ref.dtype)
    h2 = _rms(s2, w_post_ref[...].astype(f32), eps)

    # ---- MLP: gate_up matmul, SiLU(gate)*up, down matmul ----
    gu = jnp.dot(h2.astype(bf16), wgu_ref[...], preferred_element_type=f32)
    gate = gu[:, :inter]
    up = gu[:, inter:]
    act = gate * jax.nn.sigmoid(gate) * up
    out = jnp.dot(act.astype(bf16), wd_ref[...], preferred_element_type=f32)
    out_ref[...] = out.astype(out_ref.dtype)


def decoder_layer(hidden_states, residual, kparams, cos_t, sin_t):
    """Mirrors Llama3_1DecoderLayer.forward -> (hidden_states, residual)."""
    has_residual = residual is not None
    kern = functools.partial(
        _decoder_layer_kernel,
        has_residual=has_residual,
        n_heads=N_HEADS, n_kv_heads=N_KV_HEADS, head_dim=HEAD_DIM,
        q_size=Q_SIZE, kv_size=KV_SIZE, inter=INTERMEDIATE, eps=RMS_EPS)

    args = [hidden_states]
    if has_residual:
        args.append(residual)
    args += [kparams["input_ln"], kparams["post_ln"],
             kparams["wbig"], kparams["wo"], kparams["wgu"], kparams["wd"],
             cos_t, sin_t]

    out, new_res = pl.pallas_call(
        kern,
        out_shape=(jax.ShapeDtypeStruct(hidden_states.shape, hidden_states.dtype),
                   jax.ShapeDtypeStruct(hidden_states.shape, hidden_states.dtype)),
        in_specs=[_VMEM] * len(args),
        out_specs=(_VMEM, _VMEM),
    )(*args)
    return out, new_res


# ----------------------------------------------------------------------------
# One-time parameter / table preparation (outside the kernel)
# ----------------------------------------------------------------------------
def _rot_half_cols(w, n_heads, head_dim):
    """Columns of W@R where R is the per-head rotate-half (+sign) permutation."""
    half = head_dim // 2
    w4 = w.reshape(w.shape[0], n_heads, 2, half)
    out = jnp.concatenate([-w4[:, :, 1, :], w4[:, :, 0, :]], axis=2)
    return out.reshape(w.shape[0], n_heads * head_dim)


def prepare_params(params):
    wqkv = params["wqkv"]
    wq = wqkv[:, :Q_SIZE] * (HEAD_DIM ** -0.5)        # q-scale folded in
    wk = wqkv[:, Q_SIZE:Q_SIZE + KV_SIZE]
    wv = wqkv[:, Q_SIZE + KV_SIZE:]
    wbig = jnp.concatenate(
        [wq, wk, wv,
         _rot_half_cols(wq, N_HEADS, HEAD_DIM),
         _rot_half_cols(wk, N_KV_HEADS, HEAD_DIM)], axis=1).astype(jnp.bfloat16)
    return {
        "input_ln": params["input_ln"],
        "post_ln": params["post_ln"],
        "wbig": wbig,                                  # (hidden, qkv + q + kv) bf16
        "wo": params["wo"].astype(jnp.bfloat16),
        "wgu": params["wgu"].astype(jnp.bfloat16),
        "wd": params["wd"].astype(jnp.bfloat16),
    }


def _rope_cos_sin(positions):
    inv_freq = 1.0 / (ROPE_THETA ** (jnp.arange(0, HEAD_DIM, 2,
                                                dtype=jnp.float32) / HEAD_DIM))
    freqs = positions.astype(jnp.float32)[:, None] * inv_freq[None, :]
    return jnp.cos(freqs), jnp.sin(freqs)               # (T, head_dim//2)


def rope_tables_flat(positions):
    """(T, q_size + kv_size) cos/sin tables (q-scale lives in the weights)."""
    cos, sin = _rope_cos_sin(positions)
    cos_h = jnp.concatenate([cos, cos], axis=-1)         # (T, head_dim)
    sin_h = jnp.concatenate([sin, sin], axis=-1)
    cos_t = jnp.concatenate(
        [jnp.tile(cos_h, (1, N_HEADS)), jnp.tile(cos_h, (1, N_KV_HEADS))], axis=-1)
    sin_t = jnp.concatenate(
        [jnp.tile(sin_h, (1, N_HEADS)), jnp.tile(sin_h, (1, N_KV_HEADS))], axis=-1)
    return cos_t.astype(DTYPE), sin_t.astype(DTYPE)


# ----------------------------------------------------------------------------
# Pure-JAX reference (f32, unfused) for a correctness self-check
# ----------------------------------------------------------------------------
def _ref_rms(x, w, eps=RMS_EPS):
    x32 = x.astype(jnp.float32)
    return x32 * lax.rsqrt(jnp.mean(x32 * x32, -1, keepdims=True) + eps) * w


def ref_decoder_layer(positions, hidden_states, residual, params):
    if residual is None:
        residual = hidden_states
        h = _ref_rms(hidden_states, params["input_ln"][0])
    else:
        s = hidden_states + residual
        residual = s
        h = _ref_rms(s, params["input_ln"][0])
    cos, sin = _rope_cos_sin(positions)
    qkv = h @ params["wqkv"]
    q, k, v = (qkv[:, :Q_SIZE], qkv[:, Q_SIZE:Q_SIZE + KV_SIZE],
               qkv[:, Q_SIZE + KV_SIZE:])

    def rope(xh):
        x1, x2 = xh[:, :HEAD_DIM // 2], xh[:, HEAD_DIM // 2:]
        return jnp.concatenate([x1 * cos - x2 * sin, x2 * cos + x1 * sin], -1)

    T = h.shape[0]
    causal = jnp.tril(jnp.ones((T, T), bool))
    outs = []
    group = N_HEADS // N_KV_HEADS
    for hh in range(N_HEADS):
        kvh = hh // group
        qh = rope(q[:, hh * HEAD_DIM:(hh + 1) * HEAD_DIM]) * (HEAD_DIM ** -0.5)
        kh = rope(k[:, kvh * HEAD_DIM:(kvh + 1) * HEAD_DIM])
        vh = v[:, kvh * HEAD_DIM:(kvh + 1) * HEAD_DIM]
        s = jnp.where(causal, qh @ kh.T, -1e30)
        outs.append(jax.nn.softmax(s, -1) @ vh)
    h = jnp.concatenate(outs, -1) @ params["wo"]

    s = h + residual
    residual = s
    h = _ref_rms(s, params["post_ln"][0])
    gu = h @ params["wgu"]
    gate, up = gu[:, :INTERMEDIATE], gu[:, INTERMEDIATE:]
    h = (gate * jax.nn.sigmoid(gate) * up) @ params["wd"]
    return h, residual


# ----------------------------------------------------------------------------
def make_params(key):
    ks = jax.random.split(key, 4)
    scale = 0.02
    return {
        "input_ln": jnp.ones((1, HIDDEN), DTYPE),
        "post_ln": jnp.ones((1, HIDDEN), DTYPE),
        # pre-transposed weights: (in, out)
        "wqkv": (scale * jax.random.normal(ks[0], (HIDDEN, QKV_SIZE))).astype(DTYPE),
        "wo": (scale * jax.random.normal(ks[1], (Q_SIZE, HIDDEN))).astype(DTYPE),
        "wgu": (scale * jax.random.normal(ks[2], (HIDDEN, 2 * INTERMEDIATE))).astype(DTYPE),
        "wd": (scale * jax.random.normal(ks[3], (INTERMEDIATE, HIDDEN))).astype(DTYPE),
    }


if __name__ == "__main__":
    key = jax.random.PRNGKey(0)
    kp, kx = jax.random.split(key)
    params = make_params(kp)
    kparams = prepare_params(params)                 # one-time weight transform

    positions = jnp.arange(SEQ, dtype=jnp.int32)
    cos_t, sin_t = rope_tables_flat(positions)       # built once, reused
    hidden_states = jax.random.normal(kx, (SEQ, HIDDEN), DTYPE)

    # first layer (residual=None, no residual DMA) then a second call with the
    # carried residual.
    h1, res1 = decoder_layer(hidden_states, None, kparams, cos_t, sin_t)
    h2, res2 = decoder_layer(h1, res1, kparams, cos_t, sin_t)
    jax.block_until_ready((h2, res2))

    # correctness self-check vs pure-JAX f32 reference (bf16 matmul operands +
    # approx reciprocal in the kernel -> looser tolerance)
    r1, rr1 = ref_decoder_layer(positions, hidden_states, None, params)
    r2, rr2 = ref_decoder_layer(positions, r1, rr1, params)
    assert jnp.allclose(h1, r1, atol=2e-2, rtol=2e-2)
    assert jnp.allclose(res1, rr1, atol=2e-2, rtol=2e-2)
    assert jnp.allclose(h2, r2, atol=2e-2, rtol=2e-2)
    assert jnp.allclose(res2, rr2, atol=2e-2, rtol=2e-2)

    print("KERNEL_OK")
</pallas_src>

<mosaic_0001>
module attributes {stable_mosaic.version = 11 : i64} {
  func.func @_decoder_layer_kernel(%arg0: memref<16x128xf32, #tpu.memory_space<vmem>>, %arg1: memref<1x128xf32, #tpu.memory_space<vmem>>, %arg2: memref<1x128xf32, #tpu.memory_space<vmem>>, %arg3: memref<128x448xbf16, #tpu.memory_space<vmem>>, %arg4: memref<128x128xbf16, #tpu.memory_space<vmem>>, %arg5: memref<128x512xbf16, #tpu.memory_space<vmem>>, %arg6: memref<256x128xbf16, #tpu.memory_space<vmem>>, %arg7: memref<16x192xf32, #tpu.memory_space<vmem>>, %arg8: memref<16x192xf32, #tpu.memory_space<vmem>>, %arg9: memref<16x128xf32, #tpu.memory_space<vmem>>, %arg10: memref<16x128xf32, #tpu.memory_space<vmem>>) attributes {dimension_semantics = [], scalar_prefetch = 0 : i64, scratch_operands = 0 : i64, tpu.core_type = #tpu.core_type<tc>} {
    %c0 = arith.constant 0 : index
    %c0_0 = arith.constant 0 : index
    %0 = vector.load %arg0[%c0, %c0_0] : memref<16x128xf32, #tpu.memory_space<vmem>>, vector<16x128xf32>
    %c0_1 = arith.constant 0 : index
    %c0_2 = arith.constant 0 : index
    %1 = vector.load %arg1[%c0_1, %c0_2] : memref<1x128xf32, #tpu.memory_space<vmem>>, vector<1x128xf32>
    %2 = arith.mulf %0, %0 : vector<16x128xf32>
    %cst = arith.constant dense<0.000000e+00> : vector<16xf32>
    %3 = vector.multi_reduction <add>, %2, %cst [1] : vector<16x128xf32> to vector<16xf32>
    %4 = vector.shape_cast %3 : vector<16xf32> to vector<16x1xf32>
    %cst_3 = arith.constant 1.280000e+02 : f32
    %5 = vector.broadcast %cst_3 : f32 to vector<16x1xf32>
    %6 = arith.divf %4, %5 : vector<16x1xf32>
    %cst_4 = arith.constant 9.99999997E-7 : f32
    %7 = vector.broadcast %cst_4 : f32 to vector<16x1xf32>
    %8 = arith.addf %6, %7 : vector<16x1xf32>
    %9 = math.rsqrt %8 : vector<16x1xf32>
    %10 = vector.broadcast %9 : vector<16x1xf32> to vector<16x128xf32>
    %11 = arith.mulf %0, %10 : vector<16x128xf32>
    %12 = vector.broadcast %1 : vector<1x128xf32> to vector<16x128xf32>
    %13 = arith.mulf %11, %12 : vector<16x128xf32>
    %14 = arith.truncf %13 : vector<16x128xf32> to vector<16x128xbf16>
    %c0_5 = arith.constant 0 : index
    %c0_6 = arith.constant 0 : index
    %15 = vector.load %arg3[%c0_5, %c0_6] : memref<128x448xbf16, #tpu.memory_space<vmem>>, vector<128x448xbf16>
    %cst_7 = arith.constant dense<0.000000e+00> : vector<16x448xf32>
    %16 = tpu.matmul %14, %15, %cst_7 {dimension_numbers = #tpu.dot_dimension_numbers<[1], [0], [0], [1], [0, 0, 1, 1], [], []>} : vector<16x128xbf16>, vector<128x448xbf16>, vector<16x448xf32> -> vector<16x448xf32>
    %17 = vector.extract_strided_slice %16 {offsets = [0, 0], sizes = [16, 192], strides = [1, 1]} : vector<16x448xf32> to vector<16x192xf32>
    %18 = vector.extract_strided_slice %16 {offsets = [0, 192], sizes = [16, 64], strides = [1, 1]} : vector<16x448xf32> to vector<16x64xf32>
    %19 = vector.extract_strided_slice %16 {offsets = [0, 256], sizes = [16, 192], strides = [1, 1]} : vector<16x448xf32> to vector<16x192xf32>
    %c0_8 = arith.constant 0 : index
    %c0_9 = arith.constant 0 : index
    %20 = vector.load %arg7[%c0_8, %c0_9] : memref<16x192xf32, #tpu.memory_space<vmem>>, vector<16x192xf32>
    %21 = arith.mulf %17, %20 : vector<16x192xf32>
    %c0_10 = arith.constant 0 : index
    %c0_11 = arith.constant 0 : index
    %22 = vector.load %arg8[%c0_10, %c0_11] : memref<16x192xf32, #tpu.memory_space<vmem>>, vector<16x192xf32>
    %23 = arith.mulf %19, %22 : vector<16x192xf32>
    %24 = arith.addf %21, %23 : vector<16x192xf32>
    %25 = vector.extract_strided_slice %24 {offsets = [0, 0], sizes = [16, 128], strides = [1, 1]} : vector<16x192xf32> to vector<16x128xf32>
    %26 = vector.extract_strided_slice %24 {offsets = [0, 128], sizes = [16, 64], strides = [1, 1]} : vector<16x192xf32> to vector<16x64xf32>
    %27 = tpu.iota {dimensions = array<i32: 0>} : vector<16x16xi32>
    %28 = tpu.iota {dimensions = array<i32: 1>} : vector<16x16xi32>
    %29 = arith.cmpi sge, %27, %28 : vector<16x16xi32>
    %30 = vector.extract_strided_slice %25 {offsets = [0, 0], sizes = [16, 32], strides = [1, 1]} : vector<16x128xf32> to vector<16x32xf32>
    %31 = arith.truncf %30 : vector<16x32xf32> to vector<16x32xbf16>
    %32 = vector.extract_strided_slice %26 {offsets = [0, 0], sizes = [16, 32], strides = [1, 1]} : vector<16x64xf32> to vector<16x32xf32>
    %33 = arith.truncf %32 : vector<16x32xf32> to vector<16x32xbf16>
    %34 = vector.extract_strided_slice %18 {offsets = [0, 0], sizes = [16, 32], strides = [1, 1]} : vector<16x64xf32> to vector<16x32xf32>
    %35 = arith.truncf %34 : vector<16x32xf32> to vector<16x32xbf16>
    %36 = tpu.transpose %33, [1, 0] : vector<16x32xbf16> -> vector<32x16xbf16>
    %cst_12 = arith.constant dense<0.000000e+00> : vector<16x16xf32>
    %37 = tpu.matmul %31, %36, %cst_12 {dimension_numbers = #tpu.dot_dimension_numbers<[1], [0], [0], [1], [0, 0, 1, 1], [], []>} : vector<16x32xbf16>, vector<32x16xbf16>, vector<16x16xf32> -> vector<16x16xf32>
    %cst_13 = arith.constant -1.000000e+30 : f32
    %38 = vector.broadcast %cst_13 : f32 to vector<16x16xf32>
    %39 = arith.select %29, %37, %38 : vector<16x16xi1>, vector<16x16xf32>
    %cst_14 = arith.constant dense<0xFF800000> : vector<16xf32>
    %40 = vector.multi_reduction <maximumf>, %39, %cst_14 [1] : vector<16x16xf32> to vector<16xf32>
    %41 = vector.shape_cast %40 : vector<16xf32> to vector<16x1xf32>
    %42 = vector.broadcast %41 : vector<16x1xf32> to vector<16x16xf32>
    %43 = arith.subf %39, %42 : vector<16x16xf32>
    %44 = math.exp %43 : vector<16x16xf32>
    %cst_15 = arith.constant dense<0.000000e+00> : vector<16xf32>
    %45 = vector.multi_reduction <add>, %44, %cst_15 [1] : vector<16x16xf32> to vector<16xf32>
    %46 = vector.shape_cast %45 : vector<16xf32> to vector<16x1xf32>
    %47 = tpu.reciprocal %46 {approx = true} : vector<16x1xf32> -> vector<16x1xf32>
    %48 = vector.broadcast %47 : vector<16x1xf32> to vector<16x16xf32>
    %49 = arith.mulf %44, %48 : vector<16x16xf32>
    %50 = arith.truncf %49 : vector<16x16xf32> to vector<16x16xbf16>
    %cst_16 = arith.constant dense<0.000000e+00> : vector<16x32xf32>
    %51 = tpu.matmul %50, %35, %cst_16 {dimension_numbers = #tpu.dot_dimension_numbers<[1], [0], [0], [1], [0, 0, 1, 1], [], []>} : vector<16x16xbf16>, vector<16x32xbf16>, vector<16x32xf32> -> vector<16x32xf32>
    %52 = arith.truncf %51 : vector<16x32xf32> to vector<16x32xbf16>
    %53 = vector.extract_strided_slice %25 {offsets = [0, 32], sizes = [16, 32], strides = [1, 1]} : vector<16x128xf32> to vector<16x32xf32>
    %54 = arith.truncf %53 : vector<16x32xf32> to vector<16x32xbf16>
    %55 = vector.extract_strided_slice %26 {offsets = [0, 0], sizes = [16, 32], strides = [1, 1]} : vector<16x64xf32> to vector<16x32xf32>
    %56 = arith.truncf %55 : vector<16x32xf32> to vector<16x32xbf16>
    %57 = vector.extract_strided_slice %18 {offsets = [0, 0], sizes = [16, 32], strides = [1, 1]} : vector<16x64xf32> to vector<16x32xf32>
    %58 = arith.truncf %57 : vector<16x32xf32> to vector<16x32xbf16>
    %59 = tpu.transpose %56, [1, 0] : vector<16x32xbf16> -> vector<32x16xbf16>
    %cst_17 = arith.constant dense<0.000000e+00> : vector<16x16xf32>
    %60 = tpu.matmul %54, %59, %cst_17 {dimension_numbers = #tpu.dot_dimension_numbers<[1], [0], [0], [1], [0, 0, 1, 1], [], []>} : vector<16x32xbf16>, vector<32x16xbf16>, vector<16x16xf32> -> vector<16x16xf32>
    %cst_18 = arith.constant -1.000000e+30 : f32
    %61 = vector.broadcast %cst_18 : f32 to vector<16x16xf32>
    %62 = arith.select %29, %60, %61 : vector<16x16xi1>, vector<16x16xf32>
    %cst_19 = arith.constant dense<0xFF800000> : vector<16xf32>
    %63 = vector.multi_reduction <maximumf>, %62, %cst_19 [1] : vector<16x16xf32> to vector<16xf32>
    %64 = vector.shape_cast %63 : vector<16xf32> to vector<16x1xf32>
    %65 = vector.broadcast %64 : vector<16x1xf32> to vector<16x16xf32>
    %66 = arith.subf %62, %65 : vector<16x16xf32>
    %67 = math.exp %66 : vector<16x16xf32>
    %cst_20 = arith.constant dense<0.000000e+00> : vector<16xf32>
    %68 = vector.multi_reduction <add>, %67, %cst_20 [1] : vector<16x16xf32> to vector<16xf32>
    %69 = vector.shape_cast %68 : vector<16xf32> to vector<16x1xf32>
    %70 = tpu.reciprocal %69 {approx = true} : vector<16x1xf32> -> vector<16x1xf32>
    %71 = vector.broadcast %70 : vector<16x1xf32> to vector<16x16xf32>
    %72 = arith.mulf %67, %71 : vector<16x16xf32>
    %73 = arith.truncf %72 : vector<16x16xf32> to vector<16x16xbf16>
    %cst_21 = arith.constant dense<0.000000e+00> : vector<16x32xf32>
    %74 = tpu.matmul %73, %58, %cst_21 {dimension_numbers = #tpu.dot_dimension_numbers<[1], [0], [0], [1], [0, 0, 1, 1], [], []>} : vector<16x16xbf16>, vector<16x32xbf16>, vector<16x32xf32> -> vector<16x32xf32>
    %75 = arith.truncf %74 : vector<16x32xf32> to vector<16x32xbf16>
    %76 = vector.extract_strided_slice %25 {offsets = [0, 64], sizes = [16, 32], strides = [1, 1]} : vector<16x128xf32> to vector<16x32xf32>
    %77 = arith.truncf %76 : vector<16x32xf32> to vector<16x32xbf16>
    %78 = vector.extract_strided_slice %26 {offsets = [0, 32], sizes = [16, 32], strides = [1, 1]} : vector<16x64xf32> to vector<16x32xf32>
    %79 = arith.truncf %78 : vector<16x32xf32> to vector<16x32xbf16>
    %80 = vector.extract_strided_slice %18 {offsets = [0, 32], sizes = [16, 32], strides = [1, 1]} : vector<16x64xf32> to vector<16x32xf32>
    %81 = arith.truncf %80 : vector<16x32xf32> to vector<16x32xbf16>
    %82 = tpu.transpose %79, [1, 0] : vector<16x32xbf16> -> vector<32x16xbf16>
    %cst_22 = arith.constant dense<0.000000e+00> : vector<16x16xf32>
    %83 = tpu.matmul %77, %82, %cst_22 {dimension_numbers = #tpu.dot_dimension_numbers<[1], [0], [0], [1], [0, 0, 1, 1], [], []>} : vector<16x32xbf16>, vector<32x16xbf16>, vector<16x16xf32> -> vector<16x16xf32>
    %cst_23 = arith.constant -1.000000e+30 : f32
    %84 = vector.broadcast %cst_23 : f32 to vector<16x16xf32>
    %85 = arith.select %29, %83, %84 : vector<16x16xi1>, vector<16x16xf32>
    %cst_24 = arith.constant dense<0xFF800000> : vector<16xf32>
    %86 = vector.multi_reduction <maximumf>, %85, %cst_24 [1] : vector<16x16xf32> to vector<16xf32>
    %87 = vector.shape_cast %86 : vector<16xf32> to vector<16x1xf32>
    %88 = vector.broadcast %87 : vector<16x1xf32> to vector<16x16xf32>
    %89 = arith.subf %85, %88 : vector<16x16xf32>
    %90 = math.exp %89 : vector<16x16xf32>
    %cst_25 = arith.constant dense<0.000000e+00> : vector<16xf32>
    %91 = vector.multi_reduction <add>, %90, %cst_25 [1] : vector<16x16xf32> to vector<16xf32>
    %92 = vector.shape_cast %91 : vector<16xf32> to vector<16x1xf32>
    %93 = tpu.reciprocal %92 {approx = true} : vector<16x1xf32> -> vector<16x1xf32>
    %94 = vector.broadcast %93 : vector<16x1xf32> to vector<16x16xf32>
    %95 = arith.mulf %90, %94 : vector<16x16xf32>
    %96 = arith.truncf %95 : vector<16x16xf32> to vector<16x16xbf16>
    %cst_26 = arith.constant dense<0.000000e+00> : vector<16x32xf32>
    %97 = tpu.matmul %96, %81, %cst_26 {dimension_numbers = #tpu.dot_dimension_numbers<[1], [0], [0], [1], [0, 0, 1, 1], [], []>} : vector<16x16xbf16>, vector<16x32xbf16>, vector<16x32xf32> -> vector<16x32xf32>
    %98 = arith.truncf %97 : vector<16x32xf32> to vector<16x32xbf16>
    %99 = vector.extract_strided_slice %25 {offsets = [0, 96], sizes = [16, 32], strides = [1, 1]} : vector<16x128xf32> to vector<16x32xf32>
    %100 = arith.truncf %99 : vector<16x32xf32> to vector<16x32xbf16>
    %101 = vector.extract_strided_slice %26 {offsets = [0, 32], sizes = [16, 32], strides = [1, 1]} : vector<16x64xf32> to vector<16x32xf32>
    %102 = arith.truncf %101 : vector<16x32xf32> to vector<16x32xbf16>
    %103 = vector.extract_strided_slice %18 {offsets = [0, 32], sizes = [16, 32], strides = [1, 1]} : vector<16x64xf32> to vector<16x32xf32>
    %104 = arith.truncf %103 : vector<16x32xf32> to vector<16x32xbf16>
    %105 = tpu.transpose %102, [1, 0] : vector<16x32xbf16> -> vector<32x16xbf16>
    %cst_27 = arith.constant dense<0.000000e+00> : vector<16x16xf32>
    %106 = tpu.matmul %100, %105, %cst_27 {dimension_numbers = #tpu.dot_dimension_numbers<[1], [0], [0], [1], [0, 0, 1, 1], [], []>} : vector<16x32xbf16>, vector<32x16xbf16>, vector<16x16xf32> -> vector<16x16xf32>
    %cst_28 = arith.constant -1.000000e+30 : f32
    %107 = vector.broadcast %cst_28 : f32 to vector<16x16xf32>
    %108 = arith.select %29, %106, %107 : vector<16x16xi1>, vector<16x16xf32>
    %cst_29 = arith.constant dense<0xFF800000> : vector<16xf32>
    %109 = vector.multi_reduction <maximumf>, %108, %cst_29 [1] : vector<16x16xf32> to vector<16xf32>
    %110 = vector.shape_cast %109 : vector<16xf32> to vector<16x1xf32>
    %111 = vector.broadcast %110 : vector<16x1xf32> to vector<16x16xf32>
    %112 = arith.subf %108, %111 : vector<16x16xf32>
    %113 = math.exp %112 : vector<16x16xf32>
    %cst_30 = arith.constant dense<0.000000e+00> : vector<16xf32>
    %114 = vector.multi_reduction <add>, %113, %cst_30 [1] : vector<16x16xf32> to vector<16xf32>
    %115 = vector.shape_cast %114 : vector<16xf32> to vector<16x1xf32>
    %116 = tpu.reciprocal %115 {approx = true} : vector<16x1xf32> -> vector<16x1xf32>
    %117 = vector.broadcast %116 : vector<16x1xf32> to vector<16x16xf32>
    %118 = arith.mulf %113, %117 : vector<16x16xf32>
    %119 = arith.truncf %118 : vector<16x16xf32> to vector<16x16xbf16>
    %cst_31 = arith.constant dense<0.000000e+00> : vector<16x32xf32>
    %120 = tpu.matmul %119, %104, %cst_31 {dimension_numbers = #tpu.dot_dimension_numbers<[1], [0], [0], [1], [0, 0, 1, 1], [], []>} : vector<16x16xbf16>, vector<16x32xbf16>, vector<16x32xf32> -> vector<16x32xf32>
    %121 = arith.truncf %120 : vector<16x32xf32> to vector<16x32xbf16>
    %122 = tpu.concatenate %52, %75, %98, %121 in 1 : vector<16x32xbf16>, vector<16x32xbf16>, vector<16x32xbf16>, vector<16x32xbf16> -> vector<16x128xbf16>
    %c0_32 = arith.constant 0 : index
    %c0_33 = arith.constant 0 : index
    %123 = vector.load %arg4[%c0_32, %c0_33] : memref<128x128xbf16, #tpu.memory_space<vmem>>, vector<128x128xbf16>
    %cst_34 = arith.constant dense<0.000000e+00> : vector<16x128xf32>
    %124 = tpu.matmul %122, %123, %cst_34 {dimension_numbers = #tpu.dot_dimension_numbers<[1], [0], [0], [1], [0, 0, 1, 1], [], []>} : vector<16x128xbf16>, vector<128x128xbf16>, vector<16x128xf32> -> vector<16x128xf32>
    %125 = arith.addf %124, %0 : vector<16x128xf32>
    %c0_35 = arith.constant 0 : index
    %c0_36 = arith.constant 0 : index
    %126 = vector.load %arg10[%c0_35, %c0_36] : memref<16x128xf32, #tpu.memory_space<vmem>>, vector<16x128xf32>
    tpu.vector_store %arg10[%c0_35, %c0_36], %125 {strides = array<i32>} : memref<16x128xf32, #tpu.memory_space<vmem>>, vector<16x128xf32>,
    %c0_37 = arith.constant 0 : index
    %c0_38 = arith.constant 0 : index
    %127 = vector.load %arg2[%c0_37, %c0_38] : memref<1x128xf32, #tpu.memory_space<vmem>>, vector<1x128xf32>
    %128 = arith.mulf %125, %125 : vector<16x128xf32>
    %cst_39 = arith.constant dense<0.000000e+00> : vector<16xf32>
    %129 = vector.multi_reduction <add>, %128, %cst_39 [1] : vector<16x128xf32> to vector<16xf32>
    %130 = vector.shape_cast %129 : vector<16xf32> to vector<16x1xf32>
    %cst_40 = arith.constant 1.280000e+02 : f32
    %131 = vector.broadcast %cst_40 : f32 to vector<16x1xf32>
    %132 = arith.divf %130, %131 : vector<16x1xf32>
    %cst_41 = arith.constant 9.99999997E-7 : f32
    %133 = vector.broadcast %cst_41 : f32 to vector<16x1xf32>
    %134 = arith.addf %132, %133 : vector<16x1xf32>
    %135 = math.rsqrt %134 : vector<16x1xf32>
    %136 = vector.broadcast %135 : vector<16x1xf32> to vector<16x128xf32>
    %137 = arith.mulf %125, %136 : vector<16x128xf32>
    %138 = vector.broadcast %127 : vector<1x128xf32> to vector<16x128xf32>
    %139 = arith.mulf %137, %138 : vector<16x128xf32>
    %140 = arith.truncf %139 : vector<16x128xf32> to vector<16x128xbf16>
    %c0_42 = arith.constant 0 : index
    %c0_43 = arith.constant 0 : index
    %141 = vector.load %arg5[%c0_42, %c0_43] : memref<128x512xbf16, #tpu.memory_space<vmem>>, vector<128x512xbf16>
    %cst_44 = arith.constant dense<0.000000e+00> : vector<16x512xf32>
    %142 = tpu.matmul %140, %141, %cst_44 {dimension_numbers = #tpu.dot_dimension_numbers<[1], [0], [0], [1], [0, 0, 1, 1], [], []>} : vector<16x128xbf16>, vector<128x512xbf16>, vector<16x512xf32> -> vector<16x512xf32>
    %143 = vector.extract_strided_slice %142 {offsets = [0, 0], sizes = [16, 256], strides = [1, 1]} : vector<16x512xf32> to vector<16x256xf32>
    %144 = vector.extract_strided_slice %142 {offsets = [0, 256], sizes = [16, 256], strides = [1, 1]} : vector<16x512xf32> to vector<16x256xf32>
    %145 = arith.negf %143 : vector<16x256xf32>
    %146 = math.exp %145 : vector<16x256xf32>
    %cst_45 = arith.constant 1.000000e+00 : f32
    %147 = vector.broadcast %cst_45 : f32 to vector<16x256xf32>
    %148 = arith.addf %147, %146 : vector<16x256xf32>
    %149 = arith.divf %147, %148 : vector<16x256xf32>
    %150 = arith.mulf %143, %149 : vector<16x256xf32>
    %151 = arith.mulf %150, %144 : vector<16x256xf32>
    %152 = arith.truncf %151 : vector<16x256xf32> to vector<16x256xbf16>
    %c0_46 = arith.constant 0 : index
    %c0_47 = arith.constant 0 : index
    %153 = vector.load %arg6[%c0_46, %c0_47] : memref<256x128xbf16, #tpu.memory_space<vmem>>, vector<256x128xbf16>
    %cst_48 = arith.constant dense<0.000000e+00> : vector<16x128xf32>
    %154 = tpu.matmul %152, %153, %cst_48 {dimension_numbers = #tpu.dot_dimension_numbers<[1], [0], [0], [1], [0, 0, 1, 1], [], []>} : vector<16x256xbf16>, vector<256x128xbf16>, vector<16x128xf32> -> vector<16x128xf32>
    %c0_49 = arith.constant 0 : index
    %c0_50 = arith.constant 0 : index
    %155 = vector.load %arg9[%c0_49, %c0_50] : memref<16x128xf32, #tpu.memory_space<vmem>>, vector<16x128xf32>
    tpu.vector_store %arg9[%c0_49, %c0_50], %154 {strides = array<i32>} : memref<16x128xf32, #tpu.memory_space<vmem>>, vector<16x128xf32>,
    return
  }
}

</mosaic_0001>

<bundles_post_ra>
// kernel: tpu_custom_call.1
= control target key start
LH: loop header
LB: loop body
LE: loop exit
PB: predicated region body
PF: predicated region fallthrough
CT: control target
= control target key end

     0   :  { %16 = vsyncpa [#allocation3], 0  ;;  %s2512_s0 = inlined_call_operand.vmem [shape: f32[16,128], index: 0, kind: input, shape index: {}]   ;;  %s2513_s1 = inlined_call_operand.vmem [shape: f32[1,128], index: 1, kind: input, shape index: {}]   ;;  %s2514_s2 = inlined_call_operand.vmem [shape: f32[1,128], index: 2, kind: input, shape index: {}]   ;;  %s2515_s3 = inlined_call_operand.vmem [shape: bf16[128,448], index: 3, kind: input, shape index: {}]   ;;  %s2516_s4 = inlined_call_operand.vmem [shape: bf16[128,128], index: 4, kind: input, shape index: {}]   ;;  %s2517_s5 = inlined_call_operand.vmem [shape: bf16[128,512], index: 5, kind: input, shape index: {}]   ;;  %s2518_s6 = inlined_call_operand.vmem [shape: bf16[256,128], index: 6, kind: input, shape index: {}]   ;;  %s2519_s7 = inlined_call_operand.vmem [shape: f32[16,192], index: 7, kind: input, shape index: {}]   ;;  %s2520_s8 = inlined_call_operand.hbm [shape: f32[16,192], index: 8, kind: input, shape index: {}]   ;;  %s2521_s9 = inlined_call_operand.hbm [shape: f32[16,128], index: 9, kind: output, shape index: {0}]   ;;  %s2522_s10 = inlined_call_operand.hbm [shape: f32[16,128], index: 10, kind: output, shape index: {1}]  }
   0x1   :  { %17 = vsyncpa [#allocation4], 0 }
   0x2   :  { %18 = vsyncpa [#allocation7], 0  ;;  %s2012_s13 = smov [#allocation2]   ;;  %s1940_s17 = scalar_lea.hbm %s2520_s8, 512 }
   0x3   :  { %s40_s14 = sshll.u32 %s2012_s13, 4  ;;  %p1941_p0 = scmp.ne.s32.totalorder %s2520_s8, %s1940_s17  ;;  %s41_s14 = int_to_ptr.vmem [resolvable:$true] %s40_s14 }
   0x4   :  { %p1944_p1 = scmp.lt.u32.totalorder %s1940_s17, %s2520_s8 }
   0x6   :  { %p1946_p2 = pnand %p1944_p1, %p1941_p0 }
   0x8   :  { %1949 = shalt.err (!%p1946_p2)
}
   0x9   :  { %s1950_s22 = scalar_lea.vmem %s41_s14, 512  ;;  %p1955_p4 = scmp.lt.s32.totalorder %s41_s14, %s41_s14 }
   0xa   :  { %p1951_p3 = scmp.ne.s32.totalorder %s41_s14, %s1950_s22  ;;  %p1956_p5 = scmp.lt.s32.totalorder %s1950_s22, %s1950_s22 }
   0xc   :  { %p1957_p6 = por %p1956_p5, %p1955_p4 }
   0xe   :  { %p1958_p7 = pnand %p1957_p6, %p1951_p3 }
  0x10   :  { %1961 = shalt.err (!%p1958_p7)
}
  0x11   :  { %s2013_s23 = smov 256   ;;  %s2014_s24 = smov 16  }
  0x12   :  { %46 = dma.hbm_to_vmem [thread:$0]  %s2520_s8, 512, %s41_s14, [#allocation3], %s2013_s23, %s2013_s23, %s2014_s24  }
  0x13   :  { %2006 = dma.done.wait [#allocation3], 512  }
  0x14   :  { %2007 = vsyncadd [#allocation3], 4294966784  ;;  %v2095_v0 = vld [vmem:[%s2512_s0] sm:$0xff]  ;;  %v2100_v1 = vld [vmem:[%s2512_s0 + $0x8] sm:$0xff]  ;;  %v2015_v34 = vmov 0   ;;  %v2016_v51 = vmov 0.0  }
  0x15   :  { %v54_v2 = vmul.f32 %v2095_v0, %v2095_v0  ;;  %v1763_v3 = vld [vmem:[%s2515_s3 + $0x4] ss:$16 sps:$4 sm:$0xff]   ;;  %v1765_v4 = vld [vmem:[%s2515_s3 + $0xc] ss:$16 sps:$4 sm:$0xff]   ;;  %v1767_v5 = vld [vmem:[%s2515_s3] ss:$16 sps:$4 sm:$0xff]   ;;  %v55_v6 = vmul.f32 %v2100_v1, %v2100_v1  ;;  %302 = vmatprep.mubr.bf16.mxu0 %v2015_v34  ;;  %345 = vmatprep.mubr.bf16.mxu1 %v2015_v34 }
  0x16   :  { %270 = vmatprep.subr.bf16.mxu0 %v1763_v3  ;;  %v1768_v7 = vld [vmem:[%s2515_s3 + $0x8] ss:$16 sps:$4 sm:$0xff]   ;;  %313 = vmatprep.subr.bf16.mxu1 %v1765_v4  ;;  %v1769_v8 = vld [vmem:[%s2515_s3 + $0x24] ss:$16 sps:$4 sm:$0xff]   ;;  %v1771_v9 = vld [vmem:[%s2515_s3 + $0x2c] ss:$16 sps:$4 sm:$0xff]  }
  0x17   :  { %56 = vadd.xlane.f32.xlu0 %v54_v2  ;;  %271 = vmatpush1.bf16.msra.mxu0 %v1767_v5  ;;  %v1773_v10 = vld [vmem:[%s2515_s3 + $0x20] ss:$16 sps:$4 sm:$0xff]   ;;  %v1774_v11 = vld [vmem:[%s2515_s3 + $0x28] ss:$16 sps:$4 sm:$0xff]   ;;  %v1775_v12 = vld [vmem:[%s2515_s3 + $0x44] ss:$16 sps:$4 sm:$0xff]  }
  0x18   :  { %314 = vmatpush1.bf16.msra.mxu1 %v1768_v7  ;;  %272 = vmatprep.subr.bf16.mxu0 %v1769_v8  ;;  %v1777_v13 = vld [vmem:[%s2515_s3 + $0x4c] ss:$16 sps:$4 sm:$0xff]   ;;  %v1779_v14 = vld [vmem:[%s2515_s3 + $0x40] ss:$16 sps:$4 sm:$0xff]   ;;  %v1780_v15 = vld [vmem:[%s2515_s3 + $0x48] ss:$16 sps:$4 sm:$0xff]  }
  0x19   :  { %315 = vmatprep.subr.bf16.mxu1 %v1771_v9  ;;  %v1781_v16 = vld [vmem:[%s2515_s3 + $0x64] ss:$16 sps:$4 sm:$0xff]   ;;  %v1783_v17 = vld [vmem:[%s2515_s3 + $0x6c] ss:$16 sps:$4 sm:$0xff]   ;;  %v1785_v18 = vld [vmem:[%s2515_s3 + $0x60] ss:$16 sps:$4 sm:$0xff]  }
  0x1a   :  { %v1786_v19 = vld [vmem:[%s2515_s3 + $0x68] ss:$16 sps:$4 sm:$0xff]   ;;  %v1787_v20 = vld [vmem:[%s2515_s3 + $0x84] ss:$16 sps:$4 sm:$0xff]   ;;  %v1789_v21 = vld [vmem:[%s2515_s3 + $0x8c] ss:$16 sps:$4 sm:$0xff]  }
  0x1b   :  { %58 = vadd.xlane.f32.xlu0 %v55_v6  ;;  %273 = vmatpush1.bf16.msra.mxu0 %v1773_v10  ;;  %v1791_v22 = vld [vmem:[%s2515_s3 + $0x80] ss:$16 sps:$4 sm:$0xff]   ;;  %v1792_v23 = vld [vmem:[%s2515_s3 + $0x88] ss:$16 sps:$4 sm:$0xff]   ;;  %v1793_v24 = vld [vmem:[%s2515_s3 + $0xa4] ss:$16 sps:$4 sm:$0xff]  }
  0x1c   :  { %316 = vmatpush1.bf16.msra.mxu1 %v1774_v11  ;;  %274 = vmatprep.subr.bf16.mxu0 %v1775_v12  ;;  %v1795_v25 = vld [vmem:[%s2515_s3 + $0xac] ss:$16 sps:$4 sm:$0xff]   ;;  %v1797_v26 = vld [vmem:[%s2515_s3 + $0xa0] ss:$16 sps:$4 sm:$0xff]   ;;  %v1798_v27 = vld [vmem:[%s2515_s3 + $0xa8] ss:$16 sps:$4 sm:$0xff]  }
  0x1d   :  { %317 = vmatprep.subr.bf16.mxu1 %v1777_v13  ;;  %v1799_v28 = vld [vmem:[%s2515_s3 + $0xc4] ss:$16 sps:$4 sm:$0xff]   ;;  %v1801_v29 = vld [vmem:[%s2515_s3 + $0xcc] ss:$16 sps:$4 sm:$0xff]   ;;  %v1803_v30 = vld [vmem:[%s2515_s3 + $0xc0] ss:$16 sps:$4 sm:$0xff]  }
  0x1e   :  { %v1804_v31 = vld [vmem:[%s2515_s3 + $0xc8] ss:$16 sps:$4 sm:$0xff]   ;;  %v1805_v32 = vld [vmem:[%s2515_s3 + $0xe4] ss:$16 sps:$4 sm:$0xff]   ;;  %v1807_v33 = vld [vmem:[%s2515_s3 + $0xec] ss:$16 sps:$4 sm:$0xff]  }
  0x1f   :  { %275 = vmatpush1.bf16.msra.mxu0 %v1779_v14  ;;  %v1809_v35 = vld [vmem:[%s2515_s3 + $0xe0] ss:$16 sps:$4 sm:$0xff]   ;;  %v1810_v36 = vld [vmem:[%s2515_s3 + $0xe8] ss:$16 sps:$4 sm:$0xff]   ;;  %vm2017_vm0 = vmmov 0   ;;  %vm386_vm1 = vcmask 261120  }
  0x20   :  { %318 = vmatpush1.bf16.msra.mxu1 %v1780_v15  ;;  %276 = vmatprep.subr.bf16.mxu0 %v1781_v16  ;;  %v1533_v46 = vld [vmem:[%s2513_s1] ss:$0 sm:$0xff]  ;;  %v357_v54 = vld [vmem:[%s2519_s7 + $0x8] sm:$0xff]  ;;  %v358_v58 = vld [vmem:[%s2519_s7 + $0x10] sm:$0xff]  ;;  %s2019_s19 = smov 96   ;;  %s2020_s20 = smov 32  }
  0x21   :  { %319 = vmatprep.subr.bf16.mxu1 %v1783_v17  ;;  %v356_v52 = vld [vmem:[%s2519_s7] sm:$0xff]  ;;  %v365_v55 = vld [vmem:[#allocation2 + $0x8] sm:$0xff]  ;;  %v366_v59 = vld [vmem:[#allocation2 + $0x10] sm:$0xff]  ;;  %vm436_vm3 = vcmask 130048   ;;  %vm879_vm5 = vcmask 523264   ;;  %vm882_vm6 = vcmask 785408  }
  0x22   :  { %v364_v53 = vld [vmem:[#allocation2] sm:$0xff]  ;;  %v367_v2 = vld [vmem:[#allocation2 + $0x18] sm:$0xff] }
  0x23   :  { %277 = vmatpush1.bf16.msra.mxu0 %v1785_v18 }
  0x24   :  { %320 = vmatpush1.bf16.msra.mxu1 %v1786_v19  ;;  %278 = vmatprep.subr.bf16.mxu0 %v1787_v20 }
  0x25   :  { %321 = vmatprep.subr.bf16.mxu1 %v1789_v21 }
  0x27   :  { %279 = vmatpush1.bf16.msra.mxu0 %v1791_v22 }
  0x28   :  { %322 = vmatpush1.bf16.msra.mxu1 %v1792_v23  ;;  %280 = vmatprep.subr.bf16.mxu0 %v1793_v24 }
  0x29   :  { %323 = vmatprep.subr.bf16.mxu1 %v1795_v25 }
  0x2b   :  { %281 = vmatpush1.bf16.msra.mxu0 %v1797_v26  ;;  %v376_v26 = vlaneseq }
  0x2c   :  { %324 = vmatpush1.bf16.msra.mxu1 %v1798_v27  ;;  %282 = vmatprep.subr.bf16.mxu0 %v1799_v28 }
  0x2d   :  { %325 = vmatprep.subr.bf16.mxu1 %v1801_v29  ;;  %v377_v27 = vshrl.u32 %v376_v26, 7  ;;  %v380_v28 = vand.u32 127, %v376_v26 }
  0x2f   :  { %283 = vmatpush1.bf16.msra.mxu0 %v1803_v30  ;;  %v378_v29 = vadd.s32 8, %v377_v27  ;;  %vm381_vm2 = vcmp.ge.s32.totalorder %v377_v27, %v380_v28 }
  0x30   :  { %326 = vmatpush1.bf16.msra.mxu1 %v1804_v31  ;;  %284 = vmatprep.subr.bf16.mxu0 %v1805_v32 }
  0x31   :  { %327 = vmatprep.subr.bf16.mxu1 %v1807_v33  ;;  %vm382_vm4 = vcmp.ge.s32.totalorder %v378_v29, %v380_v28 }
  0x33   :  { %285 = vmatpush1.bf16.msra.mxu0 %v1809_v35 }
  0x34   :  { %328 = vmatpush1.bf16.msra.mxu1 %v1810_v36  ;;  %1682 = vmatprep.subr.bf16.mxu0 %v2016_v51 }
  0x35   :  { %1688 = vmatprep.subr.bf16.mxu1 %v2016_v51 }
  0xa4   :  { %v57_v37 = vpop.xlane.xlu0 %56 }
  0xa5   :  { %v61_v38 = vmul.f32 0.0078125, %v57_v37 }
  0xa7   :  { %v63_v39 = vadd.f32 1e-06, %v61_v38 }
  0xa8   :  { %v59_v40 = vpop.xlane.xlu0 %58 }
  0xa9   :  { %1883 = vrsqrt.f32 %v63_v39  ;;  %v62_v41 = vmul.f32 0.0078125, %v59_v40 }
  0xab   :  { %v64_v42 = vadd.f32 1e-06, %v62_v41 }
  0xad   :  { %1885 = vrsqrt.f32 %v64_v42 }
  0xb3   :  { %v1884_v43 = vpop.eup %1883 }
  0xb4   :  { %v67_v44 = vmul.f32 %v1884_v43, %v2095_v0 }
  0xb6   :  { %v75_v48 = vmul.f32 %v1533_v46, %v67_v44 }
  0xb7   :  { %v1886_v45 = vpop.eup %1885 }
  0xb8   :  { %v68_v47 = vmul.f32 %v1886_v45, %v2100_v1  ;;  %v359_v1 = vld [vmem:[%s2519_s7 + $0x18] sm:$0xff]  ;;  %s2018_s7 = smov 64  }
  0xba   :  { %v76_v49 = vmul.f32 %v1533_v46, %v68_v47 }
  0xbc   :  { %v77_v50 = vpack.c.bf16 %v76_v49, %v75_v48 }
  0xbe   :  { %303 = vmatmul.mubr.bf16.vlgmr.msra.gmra.mrb[0].mxu0 %v77_v50  ;;  %346 = vmatmul.mubr.bf16.vlgmr.msra.gmra.mrb[0].mxu1 %v77_v50 }
  0xbf   :  { %1684 = vmatprep.mubr.msk.bf16.mxu0 %vm2017_vm0, %v2016_v51  ;;  %1690 = vmatprep.mubr.msk.bf16.mxu1 %vm2017_vm0, %v2016_v51 }
 0x191   :  { %v304_v56 = vpop.f32.mrb[0].mxu0  ;;  %v347_v57 = vpop.f32.mrb[0].mxu1 }
 0x192   :  { %v360_v60 = vmul.f32 %v356_v52, %v304_v56  ;;  %v368_v61 = vmul.f32 %v364_v53, %v347_v57  ;;  %v306_v62 = vpop.f32.mrb[1].mxu0  ;;  %v349_v63 = vpop.f32.mrb[1].mxu1 }
 0x193   :  { %v361_v3 = vmul.f32 %v357_v54, %v306_v62  ;;  %v369_v4 = vmul.f32 %v365_v55, %v349_v63  ;;  %v308_v5 = vpop.f32.mrb[2].mxu0  ;;  %v351_v6 = vpop.f32.mrb[2].mxu1 }
 0x194   :  { %v372_v7 = vadd.f32 %v368_v61, %v360_v60  ;;  %v362_v8 = vmul.f32 %v358_v58, %v308_v5  ;;  %v370_v9 = vmul.f32 %v366_v59, %v351_v6  ;;  %v310_v10 = vpop.f32.mrb[3].mxu0  ;;  %v353_v11 = vpop.f32.mrb[3].mxu1 }
 0x195   :  { %v373_v12 = vadd.f32 %v369_v4, %v361_v3  ;;  %v363_v13 = vmul.f32 %v359_v1, %v310_v10  ;;  %v2227_v14 = vpack.c.bf16 %v310_v10, %v306_v62  ;;  %v371_v15 = vmul.f32 %v367_v2, %v353_v11 }
 0x196   :  { %v374_v16 = vadd.f32 %v370_v9, %v362_v8 }
 0x197   :  { %v375_v17 = vadd.f32 %v371_v15, %v363_v13 }
 0x198   :  { %v383_v18 = vpack.c.bf16 %v374_v16, %v372_v7 }
 0x199   :  { %v384_v19 = vpack.c.bf16 %v375_v17, %v373_v12 }
 0x19a   :  { %626 = vrot.lane.b32.xlu0 %v383_v18, %s2018_s7  ;;  %510 = vrot.lane.b32.xlu1 %v383_v18, %s2019_s19 }
 0x19b   :  { %v391_v20 = vsel %vm386_vm1, %v384_v19, 0 }
 0x19c   :  { %1683 = vmatpush3.bf16.xpose.msra.mxu0 %v391_v20 }
 0x19d   :  { %1694 = vmatprep.subr.bf16.mxu0 %v2016_v51 }
 0x19e   :  { %629 = vrot.lane.b32.xlu1 %v384_v19, %s2019_s19 }
 0x1a2   :  { %751 = vrot.lane.b32.xlu1 %v383_v18, %s2020_s20 }
 0x1a3   :  { %1685 = vmatmul.mubr.msk.bf16.vlgmr.msra.gmra.mrb[4].mxu0 %vm386_vm1, %v383_v18 }
 0x1a4   :  { %1695 = vmatpush3.bf16.xpose.msra.mxu0 %v391_v20  ;;  %1696 = vmatprep.mubr.msk.bf16.mxu0 %vm2017_vm0, %v2016_v51 }
 0x1a5   :  { %1706 = vmatprep.subr.bf16.mxu0 %v2016_v51 }
 0x20c   :  { %v511_v21 = vpop.permute.xlu1 %510  ;;  %v627_v24 = vpop.permute.xlu0 %626 }
 0x20d   :  { %1697 = vmatmul.mubr.msk.bf16.vlgmr.msra.gmra.mrb[8].mxu0 %vm386_vm1, %v511_v21 }
 0x20e   :  { %1708 = vmatprep.mubr.msk.bf16.mxu0 %vm2017_vm0, %v2016_v51 }
 0x210   :  { %v630_v22 = vpop.permute.xlu1 %629 }
 0x211   :  { %v635_v23 = vsel %vm386_vm1, %v630_v22, 0 }
 0x212   :  { %1707 = vmatpush3.bf16.xpose.msra.mxu0 %v635_v23 }
 0x213   :  { %1718 = vmatprep.subr.bf16.mxu0 %v2016_v51 }
 0x214   :  { %v752_v25 = vpop.permute.xlu1 %751 }
 0x219   :  { %1709 = vmatmul.mubr.msk.bf16.vlgmr.msra.gmra.mrb[12].mxu0 %vm386_vm1, %v627_v24 }
 0x21a   :  { %1719 = vmatpush3.bf16.xpose.msra.mxu0 %v635_v23  ;;  %1720 = vmatprep.mubr.msk.bf16.mxu0 %vm2017_vm0, %v2016_v51 }
 0x21b   :  { %1730 = vmatprep.subr.bf16.mxu0 %v2016_v51 }
 0x221   :  { %1721 = vmatmul.mubr.msk.bf16.vlgmr.msra.gmra.mrb[16].mxu0 %vm386_vm1, %v752_v25 }
 0x222   :  { %1746 = vmatprep.mubr.msk.bf16.mxu0 %vm2017_vm0, %v2016_v51 }
 0x276   :  { %v427_v30 = vpop.f32.mrb[4].mxu0 }
 0x277   :  { %v434_v31 = vsel %vm381_vm2, %v427_v30, -1e+30  ;;  %v1686_v32 = vpop.f32.mrb[5].mxu0 }
 0x278   :  { %v430_v33 = vpop.f32.mrb[6].mxu0  ;;  %v437_v35 = vsel %vm436_vm3, %v434_v31, -inf }
 0x279   :  { %v435_v36 = vsel %vm382_vm4, %v430_v33, -1e+30  ;;  %438 = vmax.xlane.f32.xlu1 %v437_v35  ;;  %v1687_v37 = vpop.f32.mrb[7].mxu0 }
 0x27a   :  { %v440_v38 = vsel %vm436_vm3, %v435_v36, -inf }
 0x27b   :  { %441 = vmax.xlane.f32.xlu0 %v440_v38 }
 0x2e0   :  { %v549_v39 = vpop.f32.mrb[8].mxu0 }
 0x2e1   :  { %v556_v40 = vsel %vm381_vm2, %v549_v39, -1e+30  ;;  %v1698_v41 = vpop.f32.mrb[9].mxu0 }
 0x2e2   :  { %v552_v42 = vpop.f32.mrb[10].mxu0  ;;  %v558_v43 = vsel %vm436_vm3, %v556_v40, -inf }
 0x2e3   :  { %v557_v44 = vsel %vm382_vm4, %v552_v42, -1e+30  ;;  %559 = vmax.xlane.f32.xlu1 %v558_v43  ;;  %v1699_v45 = vpop.f32.mrb[11].mxu0 }
 0x2e4   :  { %v561_v46 = vsel %vm436_vm3, %v557_v44, -inf }
 0x2e7   :  { %562 = vmax.xlane.f32.xlu1 %v561_v46 }
 0x2ec   :  { %v671_v47 = vpop.f32.mrb[12].mxu0 }
 0x2ed   :  { %v678_v48 = vsel %vm381_vm2, %v671_v47, -1e+30  ;;  %v1710_v49 = vpop.f32.mrb[13].mxu0 }
 0x2ee   :  { %v674_v50 = vpop.f32.mrb[14].mxu0  ;;  %v680_v52 = vsel %vm436_vm3, %v678_v48, -inf }
 0x2ef   :  { %v679_v53 = vsel %vm382_vm4, %v674_v50, -1e+30  ;;  %681 = vmax.xlane.f32.xlu1 %v680_v52  ;;  %v1711_v54 = vpop.f32.mrb[15].mxu0 }
 0x2f0   :  { %v683_v55 = vsel %vm436_vm3, %v679_v53, -inf }
 0x2f3   :  { %684 = vmax.xlane.f32.xlu1 %v683_v55 }
 0x2f4   :  { %v790_v56 = vpop.f32.mrb[16].mxu0 }
 0x2f5   :  { %v797_v57 = vsel %vm381_vm2, %v790_v56, -1e+30  ;;  %v1722_v58 = vpop.f32.mrb[17].mxu0 }
 0x2f6   :  { %v793_v59 = vpop.f32.mrb[18].mxu0  ;;  %v799_v60 = vsel %vm436_vm3, %v797_v57, -inf }
 0x2f7   :  { %v798_v61 = vsel %vm382_vm4, %v793_v59, -1e+30  ;;  %800 = vmax.xlane.f32.xlu0 %v799_v60  ;;  %v1723_v62 = vpop.f32.mrb[19].mxu0 }
 0x2f8   :  { %v802_v63 = vsel %vm436_vm3, %v798_v61, -inf }
 0x2f9   :  { %803 = vmax.xlane.f32.xlu1 %v802_v63 }
 0x306   :  { %v439_v1 = vpop.xlane.xlu1 %438 }
 0x307   :  { %v443_v2 = vsub.f32 %v434_v31, %v439_v1 }
 0x308   :  { %v442_v3 = vpop.xlane.xlu0 %441 }
 0x309   :  { %v445_v4 = vmul.f32 1.442695, %v443_v2  ;;  %v444_v5 = vsub.f32 %v435_v36, %v442_v3 }
 0x30b   :  { %1887 = vpow2.f32 %v445_v4  ;;  %v447_v6 = vmul.f32 1.442695, %v444_v5 }
 0x30d   :  { %1889 = vpow2.f32 %v447_v6 }
 0x315   :  { %v2267_v7 = vpop.eup %1887 }
 0x316   :  { %v449_v8 = vsel %vm436_vm3, %v2267_v7, 0.0 }
 0x317   :  { %v1890_v9 = vpop.eup %1889  ;;  %450 = vadd.xlane.f32.xlu0 %v449_v8 }
 0x318   :  { %v452_v10 = vsel %vm436_vm3, %v1890_v9, 0.0 }
 0x319   :  { %453 = vadd.xlane.f32.xlu1 %v452_v10  ;;  %v1811_v10 = vld [vmem:[%s2516_s4] sm:$0xff]  }
 0x31a   :  { %1731 = vmatpush3.bf16.msra.mxu0 %v1811_v10  ;;  %v1854_v10 = vld [vmem:[%s2517_s5 + $0xac] ss:$16 sps:$4 sm:$0xff]  }
 0x31b   :  { %1732 = vmatprep.subr.bf16.mxu0 %v2016_v51 }
 0x370   :  { %v560_v11 = vpop.xlane.xlu1 %559 }
 0x371   :  { %v564_v12 = vsub.f32 %v556_v40, %v560_v11  ;;  %v1812_v11 = vld [vmem:[%s2516_s4 + $0x8] sm:$0xff]  }
 0x372   :  { %1733 = vmatpush3.bf16.msra.mxu0 %v1812_v11  ;;  %v1849_v11 = vld [vmem:[%s2517_s5 + $0xa0] ss:$16 sps:$4 sm:$0xff]  }
 0x373   :  { %v566_v13 = vmul.f32 1.442695, %v564_v12  ;;  %v1813_v12 = vld [vmem:[%s2516_s4 + $0x10] sm:$0xff]   ;;  %1734 = vmatprep.subr.bf16.mxu0 %v2016_v51 }
 0x374   :  { %v563_v15 = vpop.xlane.xlu1 %562 }
 0x375   :  { %1891 = vpow2.f32 %v566_v13  ;;  %v565_v16 = vsub.f32 %v557_v44, %v563_v15  ;;  %v1814_v13 = vld [vmem:[%s2516_s4 + $0x18] sm:$0xff]  }
 0x376   :  { %1735 = vmatpush3.bf16.msra.mxu0 %v1813_v12  ;;  %v1852_v12 = vld [vmem:[%s2517_s5 + $0xa8] ss:$16 sps:$4 sm:$0xff]  }
 0x377   :  { %v568_v17 = vmul.f32 1.442695, %v565_v16  ;;  %1736 = vmatprep.subr.bf16.mxu0 %v2016_v51  ;;  %v1815_v16 = vld [vmem:[%s2516_s4 + $0x20] sm:$0xff]  }
 0x379   :  { %1893 = vpow2.f32 %v568_v17 }
 0x37a   :  { %1737 = vmatpush3.bf16.msra.mxu0 %v1814_v13  ;;  %v1857_v13 = vld [vmem:[%s2517_s5 + $0xc4] ss:$16 sps:$4 sm:$0xff]  }
 0x37b   :  { %1738 = vmatprep.subr.bf16.mxu0 %v2016_v51 }
 0x37c   :  { %v682_v18 = vpop.xlane.xlu1 %681 }
 0x37d   :  { %v686_v19 = vsub.f32 %v678_v48, %v682_v18 }
 0x37e   :  { %1739 = vmatpush3.bf16.msra.mxu0 %v1815_v16  ;;  %v1855_v16 = vld [vmem:[%s2517_s5 + $0xc0] ss:$16 sps:$4 sm:$0xff]  }
 0x37f   :  { %v2272_v20 = vpop.eup %1891  ;;  %v688_v21 = vmul.f32 1.442695, %v686_v19  ;;  %v1816_v19 = vld [vmem:[%s2516_s4 + $0x28] sm:$0xff]   ;;  %1740 = vmatprep.subr.bf16.mxu0 %v2016_v51 }
 0x380   :  { %v685_v22 = vpop.xlane.xlu1 %684  ;;  %v570_v23 = vsel %vm436_vm3, %v2272_v20, 0.0 }
 0x381   :  { %1895 = vpow2.f32 %v688_v21  ;;  %v687_v24 = vsub.f32 %v679_v53, %v685_v22  ;;  %571 = vadd.xlane.f32.xlu0 %v570_v23  ;;  %v1817_v23 = vld [vmem:[%s2516_s4 + $0x30] sm:$0xff]  }
 0x382   :  { %1741 = vmatpush3.bf16.msra.mxu0 %v1816_v19  ;;  %v1866_v19 = vld [vmem:[%s2517_s5 + $0xec] ss:$16 sps:$4 sm:$0xff]  }
 0x383   :  { %v1894_v25 = vpop.eup %1893  ;;  %v690_v26 = vmul.f32 1.442695, %v687_v24  ;;  %1742 = vmatprep.subr.bf16.mxu0 %v2016_v51 }
 0x384   :  { %v801_v27 = vpop.xlane.xlu0 %800  ;;  %v573_v28 = vsel %vm436_vm3, %v1894_v25, 0.0 }
 0x385   :  { %1897 = vpow2.f32 %v690_v26  ;;  %v805_v29 = vsub.f32 %v797_v57, %v801_v27  ;;  %574 = vadd.xlane.f32.xlu1 %v573_v28  ;;  %v1818_v26 = vld [vmem:[%s2516_s4 + $0x38] sm:$0xff]  }
 0x386   :  { %v804_v30 = vpop.xlane.xlu1 %803  ;;  %1743 = vmatpush3.bf16.msra.mxu0 %v1817_v23 }
 0x387   :  { %v807_v31 = vmul.f32 1.442695, %v805_v29  ;;  %v806_v32 = vsub.f32 %v798_v61, %v804_v30  ;;  %1744 = vmatprep.subr.bf16.mxu0 %v2016_v51 }
 0x389   :  { %1899 = vpow2.f32 %v807_v31  ;;  %v809_v33 = vmul.f32 1.442695, %v806_v32 }
 0x38a   :  { %1745 = vmatpush3.bf16.msra.mxu0 %v1818_v26 }
 0x38b   :  { %v1896_v35 = vpop.eup %1895  ;;  %1901 = vpow2.f32 %v809_v33 }
 0x38c   :  { %v692_v36 = vsel %vm436_vm3, %v1896_v35, 0.0 }
 0x38d   :  { %693 = vadd.xlane.f32.xlu0 %v692_v36 }
 0x38f   :  { %v1898_v37 = vpop.eup %1897 }
 0x390   :  { %v695_v38 = vsel %vm436_vm3, %v1898_v37, 0.0 }
 0x391   :  { %696 = vadd.xlane.f32.xlu1 %v695_v38 }
 0x393   :  { %v1900_v39 = vpop.eup %1899 }
 0x394   :  { %v811_v40 = vsel %vm436_vm3, %v1900_v39, 0.0 }
 0x395   :  { %v1902_v41 = vpop.eup %1901  ;;  %812 = vadd.xlane.f32.xlu0 %v811_v40 }
 0x396   :  { %v814_v42 = vsel %vm436_vm3, %v1902_v41, 0.0 }
 0x397   :  { %815 = vadd.xlane.f32.xlu1 %v814_v42 }
 0x3a4   :  { %v451_v44 = vpop.xlane.xlu0 %450 }
 0x3a6   :  { %v454_v43 = vpop.xlane.xlu1 %453 }
 0x3a7   :  { %1903 = vrcp.f32 %v454_v43 }
 0x3a8   :  { %703 = vrot.lane.b32.xlu1 %v2227_v14, %s2020_s20  ;;  %1905 = vrcp.f32 %v451_v44 }
 0x3ab   :  { %461 = vrot.lane.b32.xlu0 %v2227_v14, %s2018_s7 }
 0x3b1   :  { %v1904_v48 = vpop.eup %1903 }
 0x3b2   :  { %v1906_v50 = vpop.eup %1905  ;;  %v458_v52 = vmul.f32 %v1904_v48, %v1890_v9  ;;  %v1824_v48 = vld [vmem:[%s2517_s5 + $0xc] ss:$16 sps:$4 sm:$0xff]  }
 0x3b3   :  { %v457_v54 = vmul.f32 %v1906_v50, %v2267_v7  ;;  %1252 = vmatprep.subr.bf16.mxu0 %v1824_v48  ;;  %v1825_v50 = vld [vmem:[%s2517_s5 + $0x20] ss:$16 sps:$4 sm:$0xff]  }
 0x3b4   :  { %v1879_v48 = vld [vmem:[%s2518_s6 + $0x70] sm:$0xff]  }
 0x3b5   :  { %v459_v14 = vpack.c.bf16 %v458_v52, %v457_v54  ;;  %v1828_v52 = vld [vmem:[%s2517_s5 + $0x28] ss:$16 sps:$4 sm:$0xff]   ;;  %v1836_v54 = vld [vmem:[%s2517_s5 + $0x4c] ss:$16 sps:$4 sm:$0xff]  }
 0x40e   :  { %v572_v45 = vpop.xlane.xlu0 %571 }
 0x412   :  { %v575_v46 = vpop.xlane.xlu1 %574 }
 0x413   :  { %1907 = vrcp.f32 %v575_v46  ;;  %v1821_v46 = vld [vmem:[%s2517_s5 + $0x4] ss:$16 sps:$4 sm:$0xff]  }
 0x414   :  { %1909 = vrcp.f32 %v572_v45  ;;  %v1819_v45 = vld [vmem:[%s2517_s5] ss:$16 sps:$4 sm:$0xff]  }
 0x41a   :  { %v694_v47 = vpop.xlane.xlu0 %693 }
 0x41d   :  { %v1908_v56 = vpop.eup %1907 }
 0x41e   :  { %v697_v53 = vpop.xlane.xlu1 %696  ;;  %v1910_v57 = vpop.eup %1909  ;;  %v579_v58 = vmul.f32 %v1908_v56, %v1894_v25 }
 0x41f   :  { %1911 = vrcp.f32 %v697_v53  ;;  %v578_v60 = vmul.f32 %v1910_v57, %v2272_v20  ;;  %v1833_v53 = vld [vmem:[%s2517_s5 + $0x44] ss:$16 sps:$4 sm:$0xff]  }
 0x420   :  { %1913 = vrcp.f32 %v694_v47  ;;  %v1822_v47 = vld [vmem:[%s2517_s5 + $0x8] ss:$16 sps:$4 sm:$0xff]  }
 0x421   :  { %v580_v61 = vpack.c.bf16 %v579_v58, %v578_v60  ;;  %v1939_v60 = vld [vmem:[%s2512_s0 + $0x8] sm:$0xff] }
 0x422   :  { %v813_v49 = vpop.xlane.xlu0 %812 }
 0x424   :  { %v816_v59 = vpop.xlane.xlu1 %815 }
 0x425   :  { %1915 = vrcp.f32 %v816_v59 }
 0x426   :  { %v462_v55 = vpop.permute.xlu0 %461  ;;  %1917 = vrcp.f32 %v813_v49  ;;  %v1830_v49 = vld [vmem:[%s2517_s5 + $0x2c] ss:$16 sps:$4 sm:$0xff]  }
 0x427   :  { %1689 = vmatpush3.bf16.msra.mxu1 %v462_v55 }
 0x428   :  { %1700 = vmatprep.subr.bf16.mxu1 %v2016_v51  ;;  %v704_v63 = vpop.permute.xlu1 %703 }
 0x429   :  { %v1912_v62 = vpop.eup %1911 }
 0x42a   :  { %1691 = vmatmul.mubr.msk.bf16.vlgmr.msra.gmra.mrb[4].mxu1 %vm436_vm3, %v459_v14  ;;  %v1914_v1 = vpop.eup %1913  ;;  %v701_v2 = vmul.f32 %v1912_v62, %v1898_v37  ;;  %v1834_v14 = vld [vmem:[%s2517_s5 + $0x48] ss:$16 sps:$4 sm:$0xff]  }
 0x42b   :  { %1701 = vmatpush3.bf16.msra.mxu1 %v462_v55  ;;  %1702 = vmatprep.mubr.msk.bf16.mxu1 %vm2017_vm0, %v2016_v51  ;;  %v700_v3 = vmul.f32 %v1914_v1, %v1896_v35  ;;  %v1831_v55 = vld [vmem:[%s2517_s5 + $0x40] ss:$16 sps:$4 sm:$0xff]  }
 0x42c   :  { %1712 = vmatprep.subr.bf16.mxu1 %v2016_v51 }
 0x42d   :  { %v702_v4 = vpack.c.bf16 %v701_v2, %v700_v3  ;;  %v1839_v2 = vld [vmem:[%s2517_s5 + $0x64] ss:$16 sps:$4 sm:$0xff]   ;;  %v1837_v3 = vld [vmem:[%s2517_s5 + $0x60] ss:$16 sps:$4 sm:$0xff]  }
 0x42f   :  { %v1916_v5 = vpop.eup %1915 }
 0x430   :  { %v1918_v6 = vpop.eup %1917  ;;  %v820_v7 = vmul.f32 %v1916_v5, %v1902_v41  ;;  %v1843_v5 = vld [vmem:[%s2517_s5 + $0x80] ss:$16 sps:$4 sm:$0xff]  }
 0x431   :  { %v819_v8 = vmul.f32 %v1918_v6, %v1900_v39  ;;  %v1845_v6 = vld [vmem:[%s2517_s5 + $0x84] ss:$16 sps:$4 sm:$0xff]  }
 0x432   :  { %1703 = vmatmul.mubr.msk.bf16.vlgmr.msra.gmra.mrb[8].mxu1 %vm436_vm3, %v580_v61 }
 0x433   :  { %1713 = vmatpush3.bf16.msra.mxu1 %v704_v63  ;;  %1714 = vmatprep.mubr.msk.bf16.mxu1 %vm2017_vm0, %v2016_v51  ;;  %v821_v9 = vpack.c.bf16 %v820_v7, %v819_v8  ;;  %v1846_v7 = vld [vmem:[%s2517_s5 + $0x88] ss:$16 sps:$4 sm:$0xff]   ;;  %v1848_v8 = vld [vmem:[%s2517_s5 + $0x8c] ss:$16 sps:$4 sm:$0xff]  }
 0x434   :  { %1724 = vmatprep.subr.bf16.mxu1 %v2016_v51 }
 0x43a   :  { %1715 = vmatmul.mubr.msk.bf16.vlgmr.msra.gmra.mrb[12].mxu1 %vm436_vm3, %v702_v4  ;;  %v1840_v4 = vld [vmem:[%s2517_s5 + $0x68] ss:$16 sps:$4 sm:$0xff]  }
 0x43b   :  { %1725 = vmatpush3.bf16.msra.mxu1 %v704_v63  ;;  %1726 = vmatprep.mubr.msk.bf16.mxu1 %vm2017_vm0, %v2016_v51 }
 0x43c   :  { %1209 = vmatprep.subr.bf16.mxu1 %v1821_v46  ;;  %v1877_v46 = vld [vmem:[%s2518_s6 + $0x68] sm:$0xff]  }
 0x442   :  { %1727 = vmatmul.mubr.msk.bf16.vlgmr.msra.gmra.mrb[16].mxu1 %vm436_vm3, %v821_v9  ;;  %v1851_v9 = vld [vmem:[%s2517_s5 + $0xa4] ss:$16 sps:$4 sm:$0xff]  }
 0x443   :  { %1241 = vmatprep.mubr.bf16.mxu1 %v2015_v34  ;;  %1210 = vmatpush1.bf16.msra.mxu1 %v1819_v45  ;;  %v1876_v45 = vld [vmem:[%s2518_s6 + $0x20] sm:$0xff]  }
 0x4fd   :  { %v501_v15 = vpop.f32.mrb[4].mxu1 }
 0x4fe   :  { %v1692_v17 = vpop.f32.mrb[5].mxu1 }
 0x4ff   :  { %v504_v18 = vpop.f32.mrb[6].mxu1  ;;  %v1858_v17 = vld [vmem:[%s2517_s5 + $0xc8] ss:$16 sps:$4 sm:$0xff]  }
 0x500   :  { %v508_v20 = vpack.c.bf16 %v504_v18, %v501_v15  ;;  %v1693_v21 = vpop.f32.mrb[7].mxu1  ;;  %v1860_v15 = vld [vmem:[%s2517_s5 + $0xcc] ss:$16 sps:$4 sm:$0xff]   ;;  %v1863_v18 = vld [vmem:[%s2517_s5 + $0xe4] ss:$16 sps:$4 sm:$0xff]  }
 0x501   :  { %v1864_v21 = vld [vmem:[%s2517_s5 + $0xe8] ss:$16 sps:$4 sm:$0xff]  }
 0x505   :  { %v618_v22 = vpop.f32.mrb[8].mxu1 }
 0x506   :  { %v1704_v24 = vpop.f32.mrb[9].mxu1 }
 0x507   :  { %v621_v25 = vpop.f32.mrb[10].mxu1 }
 0x508   :  { %v625_v27 = vpack.c.bf16 %v621_v25, %v618_v22  ;;  %v1705_v28 = vpop.f32.mrb[11].mxu1 }
 0x50a   :  { %868 = vrot.lane.b32.xlu1 %v625_v27, %s2020_s20 }
 0x50d   :  { %v743_v29 = vpop.f32.mrb[12].mxu1 }
 0x50e   :  { %v1716_v30 = vpop.f32.mrb[13].mxu1 }
 0x50f   :  { %v746_v31 = vpop.f32.mrb[14].mxu1 }
 0x510   :  { %v750_v32 = vpack.c.bf16 %v746_v31, %v743_v29  ;;  %v1717_v33 = vpop.f32.mrb[15].mxu1  ;;  %v1582_v31 = vld [vmem:[%s2514_s2] ss:$0 sm:$0xff] }
 0x512   :  { %871 = vrot.lane.b32.xlu0 %v750_v32, %s2018_s7 }
 0x515   :  { %v859_v35 = vpop.f32.mrb[16].mxu1 }
 0x516   :  { %v1728_v36 = vpop.f32.mrb[17].mxu1 }
 0x517   :  { %v862_v37 = vpop.f32.mrb[18].mxu1 }
 0x518   :  { %v866_v38 = vpack.c.bf16 %v862_v37, %v859_v35  ;;  %v1729_v39 = vpop.f32.mrb[19].mxu1  ;;  %v1867_v37 = vld [vmem:[%s2518_s6 + $0x40] sm:$0xff]  }
 0x519   :  { %v1869_v39 = vld [vmem:[%s2518_s6 + $0x48] sm:$0xff]  }
 0x51a   :  { %874 = vrot.lane.b32.xlu1 %v866_v38, %s2019_s19  ;;  %v1868_v38 = vld [vmem:[%s2518_s6] sm:$0xff]  }
 0x57c   :  { %v869_v40 = vpop.permute.xlu1 %868 }
 0x57d   :  { %v878_v41 = vsel %vm386_vm1, %v508_v20, %v869_v40  ;;  %v1861_v20 = vld [vmem:[%s2517_s5 + $0xe0] ss:$16 sps:$4 sm:$0xff]   ;;  %v1870_v40 = vld [vmem:[%s2518_s6 + $0x8] sm:$0xff]  }
 0x584   :  { %v872_v51 = vpop.permute.xlu0 %871 }
 0x585   :  { %v881_v42 = vsel %vm879_vm5, %v878_v41, %v872_v51  ;;  %v1871_v51 = vld [vmem:[%s2518_s6 + $0x50] sm:$0xff]  }
 0x586   :  { %v1872_v41 = vld [vmem:[%s2518_s6 + $0x10] sm:$0xff]  }
 0x58c   :  { %v875_v43 = vpop.permute.xlu1 %874 }
 0x58d   :  { %v884_v44 = vsel %vm882_vm6, %v881_v42, %v875_v43  ;;  %v1873_v42 = vld [vmem:[%s2518_s6 + $0x58] sm:$0xff]  }
 0x58e   :  { %1747 = vmatmul.mubr.bf16.vlgmr.msra.gmra.mrb[20].mxu0 %v884_v44  ;;  %v1874_v43 = vld [vmem:[%s2518_s6 + $0x18] sm:$0xff]   ;;  %v1875_v44 = vld [vmem:[%s2518_s6 + $0x60] sm:$0xff]  }
 0x58f   :  { %1284 = vmatprep.mubr.bf16.mxu0 %v2015_v34  ;;  %v1827_v34 = vld [vmem:[%s2517_s5 + $0x24] ss:$16 sps:$4 sm:$0xff]   ;;  %1253 = vmatpush1.bf16.msra.mxu0 %v1822_v47  ;;  %v1878_v47 = vld [vmem:[%s2518_s6 + $0x28] sm:$0xff]  }
 0x590   :  { %1211 = vmatprep.subr.bf16.mxu1 %v1827_v34  ;;  %1254 = vmatprep.subr.bf16.mxu0 %v1830_v49  ;;  %v1880_v34 = vld [vmem:[%s2518_s6 + $0x30] sm:$0xff]   ;;  %v1881_v49 = vld [vmem:[%s2518_s6 + $0x78] sm:$0xff]  }
 0x591   :  { %1212 = vmatpush1.bf16.msra.mxu1 %v1825_v50  ;;  %v1882_v50 = vld [vmem:[%s2518_s6 + $0x38] sm:$0xff]   ;;  %s2021_s6 = smov [#allocation6]  }
 0x592   :  { %1213 = vmatprep.subr.bf16.mxu1 %v1833_v53  ;;  %s1517_s11 = sshll.u32 %s2021_s6, 4  ;;  %s1518_s11 = int_to_ptr.vmem [resolvable:$true] %s1517_s11 }
 0x593   :  { %1255 = vmatpush1.bf16.msra.mxu0 %v1828_v52  ;;  %s1962_s12 = scalar_lea.vmem %s1518_s11, 256  ;;  %p1967_p9 = scmp.lt.s32.totalorder %s1518_s11, %s1518_s11 }
 0x594   :  { %1256 = vmatprep.subr.bf16.mxu0 %v1836_v54  ;;  %p1963_p8 = scmp.ne.s32.totalorder %s1518_s11, %s1962_s12  ;;  %p1968_p10 = scmp.lt.s32.totalorder %s1962_s12, %s1962_s12 }
 0x595   :  { %1214 = vmatpush1.bf16.msra.mxu1 %v1831_v55 }
 0x596   :  { %1215 = vmatprep.subr.bf16.mxu1 %v1839_v2  ;;  %p1969_p11 = por %p1968_p10, %p1967_p9 }
 0x597   :  { %1257 = vmatpush1.bf16.msra.mxu0 %v1834_v14 }
 0x598   :  { %p1970_p12 = pnand %p1969_p11, %p1963_p8 }
 0x599   :  { %1216 = vmatpush1.bf16.msra.mxu1 %v1837_v3 }
 0x59a   :  { %1217 = vmatprep.subr.bf16.mxu1 %v1845_v6 }
 0x59d   :  { %1218 = vmatpush1.bf16.msra.mxu1 %v1843_v5 }
 0x59e   :  { %1219 = vmatprep.subr.bf16.mxu1 %v1851_v9 }
 0x5a1   :  { %1220 = vmatpush1.bf16.msra.mxu1 %v1849_v11 }
 0x5a2   :  { %1221 = vmatprep.subr.bf16.mxu1 %v1857_v13 }
 0x5a5   :  { %1222 = vmatpush1.bf16.msra.mxu1 %v1855_v16 }
 0x5a6   :  { %1223 = vmatprep.subr.bf16.mxu1 %v1863_v18 }
 0x5a9   :  { %1224 = vmatpush1.bf16.msra.mxu1 %v1861_v20 }
 0x5aa   :  { %1660 = vmatprep.subr.bf16.mxu1 %v1867_v37 }
 0x661   :  { %v984_v56 = vpop.f32.mrb[20].mxu0 }
 0x662   :  { %v985_v57 = vadd.f32 %v984_v56, %v2095_v0  ;;  %v1748_v58 = vpop.f32.mrb[21].mxu0  ;;  %v1842_v0 = vld [vmem:[%s2517_s5 + $0x6c] ss:$16 sps:$4 sm:$0xff]  }
 0x663   :  { %v987_v59 = vpop.f32.mrb[22].mxu0  ;;  %1258 = vmatprep.subr.bf16.mxu0 %v1842_v0 }
 0x664   :  { %991 = vst [vmem:[#allocation6] sm:$0xff] %v985_v57  ;;  %v988_v61 = vadd.f32 %v1939_v60, %v987_v59  ;;  %v1749_v62 = vpop.f32.mrb[23].mxu0  ;;  %v994_v63 = vmul.f32 %v985_v57, %v985_v57  ;;  %1259 = vmatpush1.bf16.msra.mxu0 %v1840_v4 }
 0x665   :  { %1260 = vmatprep.subr.bf16.mxu0 %v1848_v8 }
 0x666   :  { %992 = vst [vmem:[#allocation6 + $0x8] sm:$0xff] %v988_v61  ;;  %996 = vadd.xlane.f32.xlu0 %v994_v63  ;;  %v995_v1 = vmul.f32 %v988_v61, %v988_v61 }
 0x668   :  { %998 = vadd.xlane.f32.xlu1 %v995_v1  ;;  %1261 = vmatpush1.bf16.msra.mxu0 %v1846_v7 }
 0x669   :  { %1262 = vmatprep.subr.bf16.mxu0 %v1854_v10 }
 0x66c   :  { %1263 = vmatpush1.bf16.msra.mxu0 %v1852_v12 }
 0x66d   :  { %1264 = vmatprep.subr.bf16.mxu0 %v1860_v15 }
 0x670   :  { %1265 = vmatpush1.bf16.msra.mxu0 %v1858_v17 }
 0x671   :  { %1266 = vmatprep.subr.bf16.mxu0 %v1866_v19 }
 0x674   :  { %1267 = vmatpush1.bf16.msra.mxu0 %v1864_v21 }
 0x6f3   :  { %v997_v22 = vpop.xlane.xlu0 %996 }
 0x6f4   :  { %v1000_v23 = vmul.f32 0.0078125, %v997_v22 }
 0x6f5   :  { %v999_v24 = vpop.xlane.xlu1 %998 }
 0x6f6   :  { %v1002_v25 = vadd.f32 1e-06, %v1000_v23  ;;  %v1001_v26 = vmul.f32 0.0078125, %v999_v24 }
 0x6f8   :  { %1919 = vrsqrt.f32 %v1002_v25  ;;  %v1003_v27 = vadd.f32 1e-06, %v1001_v26 }
 0x6fa   :  { %1921 = vrsqrt.f32 %v1003_v27 }
 0x702   :  { %v1920_v28 = vpop.eup %1919 }
 0x703   :  { %v1006_v29 = vmul.f32 %v1920_v28, %v985_v57 }
 0x704   :  { %v1922_v30 = vpop.eup %1921 }
 0x705   :  { %v1007_v32 = vmul.f32 %v1922_v30, %v988_v61  ;;  %v1014_v33 = vmul.f32 %v1582_v31, %v1006_v29 }
 0x707   :  { %v1015_v35 = vmul.f32 %v1582_v31, %v1007_v32 }
 0x709   :  { %v1016_v36 = vpack.c.bf16 %v1015_v35, %v1014_v33 }
 0x70b   :  { %1242 = vmatmul.mubr.bf16.vlgmr.msra.gmra.mrb[20].mxu1 %v1016_v36  ;;  %1285 = vmatmul.mubr.bf16.vlgmr.msra.gmra.mrb[24].mxu0 %v1016_v36 }
 0x70c   :  { %1661 = vmatpush3.bf16.msra.mxu1 %v1868_v38 }
 0x70d   :  { %1662 = vmatprep.subr.bf16.mxu1 %v1869_v39 }
 0x710   :  { %1663 = vmatpush3.bf16.msra.mxu1 %v1870_v40 }
 0x711   :  { %1664 = vmatprep.subr.bf16.mxu1 %v1871_v51 }
 0x714   :  { %1665 = vmatpush3.bf16.msra.mxu1 %v1872_v41 }
 0x715   :  { %1666 = vmatprep.subr.bf16.mxu1 %v1873_v42 }
 0x718   :  { %1667 = vmatpush3.bf16.msra.mxu1 %v1874_v43 }
 0x719   :  { %1668 = vmatprep.subr.bf16.mxu1 %v1875_v44 }
 0x71c   :  { %1669 = vmatpush3.bf16.msra.mxu1 %v1876_v45 }
 0x71d   :  { %1670 = vmatprep.subr.bf16.mxu1 %v1877_v46 }
 0x720   :  { %1671 = vmatpush3.bf16.msra.mxu1 %v1878_v47 }
 0x721   :  { %1672 = vmatprep.subr.bf16.mxu1 %v1879_v48 }
 0x724   :  { %1673 = vmatpush3.bf16.msra.mxu1 %v1880_v34 }
 0x725   :  { %1674 = vmatprep.subr.bf16.mxu1 %v1881_v49 }
 0x728   :  { %1675 = vmatpush3.bf16.msra.mxu1 %v1882_v50 }
 0x7de   :  { %v1243_v52 = vpop.f32.mrb[20].mxu1  ;;  %v1286_v53 = vpop.f32.mrb[24].mxu0 }
 0x7df   :  { %v1615_v54 = vmul.f32 -1.442695, %v1243_v52  ;;  %v1245_v55 = vpop.f32.mrb[21].mxu1  ;;  %v1288_v14 = vpop.f32.mrb[25].mxu0 }
 0x7e0   :  { %v1616_v56 = vmul.f32 -1.442695, %v1245_v55  ;;  %v1247_v57 = vpop.f32.mrb[22].mxu1  ;;  %v1290_v58 = vpop.f32.mrb[26].mxu0 }
 0x7e1   :  { %1923 = vpow2.f32 %v1615_v54  ;;  %v1617_v59 = vmul.f32 -1.442695, %v1247_v57  ;;  %v1249_v60 = vpop.f32.mrb[23].mxu1  ;;  %v1292_v61 = vpop.f32.mrb[27].mxu0 }
 0x7e2   :  { %1925 = vpow2.f32 %v1616_v56  ;;  %v1618_v62 = vmul.f32 -1.442695, %v1249_v60 }
 0x7e3   :  { %1927 = vpow2.f32 %v1617_v59 }
 0x7e4   :  { %1929 = vpow2.f32 %v1618_v62 }
 0x7eb   :  { %v1924_v63 = vpop.eup %1923 }
 0x7ec   :  { %v1926_v1 = vpop.eup %1925  ;;  %v1307_v2 = vadd.f32 1.0, %v1924_v63 }
 0x7ed   :  { %v1928_v0 = vpop.eup %1927  ;;  %v1308_v3 = vadd.f32 1.0, %v1926_v1 }
 0x7ee   :  { %v1930_v4 = vpop.eup %1929  ;;  %1931 = vrcp.f32 %v1307_v2  ;;  %v1309_v5 = vadd.f32 1.0, %v1928_v0 }
 0x7ef   :  { %1933 = vrcp.f32 %v1308_v3  ;;  %v1310_v6 = vadd.f32 1.0, %v1930_v4 }
 0x7f0   :  { %1935 = vrcp.f32 %v1309_v5 }
 0x7f1   :  { %1937 = vrcp.f32 %v1310_v6 }
 0x7f8   :  { %v1932_v7 = vpop.eup %1931 }
 0x7f9   :  { %v1934_v8 = vpop.eup %1933  ;;  %v1319_v9 = vmul.f32 %v1932_v7, %v1243_v52 }
 0x7fa   :  { %v1936_v10 = vpop.eup %1935  ;;  %v1320_v11 = vmul.f32 %v1934_v8, %v1245_v55 }
 0x7fb   :  { %v1938_v12 = vpop.eup %1937  ;;  %v1323_v13 = vmul.f32 %v1319_v9, %v1286_v53  ;;  %v1321_v15 = vmul.f32 %v1936_v10, %v1247_v57 }
 0x7fc   :  { %v1324_v16 = vmul.f32 %v1320_v11, %v1288_v14  ;;  %v1322_v17 = vmul.f32 %v1938_v12, %v1249_v60 }
 0x7fd   :  { %v1325_v18 = vmul.f32 %v1321_v15, %v1290_v58 }
 0x7fe   :  { %v1326_v19 = vmul.f32 %v1322_v17, %v1292_v61 }
 0x7ff   :  { %v1327_v20 = vpack.c.bf16 %v1325_v18, %v1323_v13 }
 0x800   :  { %v1328_v21 = vpack.c.bf16 %v1326_v19, %v1324_v16 }
 0x802   :  { %1489 = vmatprep.mubr.bf16.mxu1 %v1328_v21 }
 0x803   :  { %1490 = vmatmul.mubr.bf16.vlgmr.msra.gmra.mrb[24].mxu1 %v1327_v20 }
 0x804   :  { %1973 = shalt.err (!%p1970_p12)
}
 0x805   :  { %s1974_s1 = scalar_lea.hbm %s2522_s10, 256 }
 0x806   :  { %p1975_p13 = scmp.ne.s32.totalorder %s2522_s10, %s1974_s1  ;;  %p1978_p0 = scmp.lt.u32.totalorder %s1974_s1, %s2522_s10 }
 0x808   :  { %p1980_p1 = pnand %p1978_p0, %p1975_p13 }
 0x80a   :  { %1983 = shalt.err (!%p1980_p1)
}
 0x80b   :  { %s2022_s15 = smov 128   ;;  %s2023_s16 = smov 8  }
 0x80c   :  { %1523 = dma.vmem_to_hbm [thread:$0]  %s1518_s11, 256, %s2522_s10, [#allocation7], %s2022_s15, %s2022_s15, %s2023_s16  }
 0x80d   :  { %s2024_s7 = smov [#allocation5]  }
 0x80e   :  { %s1505_s0 = sshll.u32 %s2024_s7, 4  ;;  %s1506_s0 = int_to_ptr.vmem [resolvable:$true] %s1505_s0 }
 0x80f   :  { %s1984_s19 = scalar_lea.vmem %s1506_s0, 256  ;;  %p1989_p3 = scmp.lt.s32.totalorder %s1506_s0, %s1506_s0 }
 0x810   :  { %p1985_p2 = scmp.ne.s32.totalorder %s1506_s0, %s1984_s19  ;;  %p1990_p4 = scmp.lt.s32.totalorder %s1984_s19, %s1984_s19 }
 0x812   :  { %p1991_p5 = por %p1990_p4, %p1989_p3 }
 0x814   :  { %p1992_p6 = pnand %p1991_p5, %p1985_p2 }
 0x8d6   :  { %v1676_v22 = vpop.f32.mrb[24].mxu1 }
 0x8d7   :  { %v1677_v23 = vpop.f32.mrb[25].mxu1 }
 0x8d8   :  { %v1678_v24 = vadd.f32 %v1677_v23, %v1676_v22  ;;  %v1679_v25 = vpop.f32.mrb[26].mxu1 }
 0x8d9   :  { %v1680_v26 = vpop.f32.mrb[27].mxu1 }
 0x8da   :  { %1498 = vst [vmem:[#allocation5] sm:$0xff] %v1678_v24  ;;  %v1681_v27 = vadd.f32 %v1680_v26, %v1679_v25 }
 0x8dc   :  { %1499 = vst [vmem:[#allocation5 + $0x8] sm:$0xff] %v1681_v27 }
 0x8dd   :  { %1995 = shalt.err (!%p1992_p6)
}
 0x8de   :  { %s1996_s21 = scalar_lea.hbm %s2521_s9, 256 }
 0x8df   :  { %p1997_p7 = scmp.ne.s32.totalorder %s2521_s9, %s1996_s21  ;;  %p2000_p8 = scmp.lt.u32.totalorder %s1996_s21, %s2521_s9 }
 0x8e1   :  { %p2002_p9 = pnand %p2000_p8, %p1997_p7 }
 0x8e3   :  { %2005 = shalt.err (!%p2002_p9)
}
 0x8e4   :  { %1511 = dma.vmem_to_hbm [thread:$0]  %s1506_s0, 256, %s2521_s9, [#allocation4], %s2022_s15, %s2022_s15, %s2023_s16  }
 0x8e5   :  { %2008 = dma.done.wait [#allocation4], 256  }
 0x8e6   :  { %2009 = vsyncadd [#allocation4], 4294967040 }
 0x8e7   :  { %2010 = dma.done.wait [#allocation7], 256  }
 0x8e8   :  { %2011 = vsyncadd [#allocation7], 4294967040 }
 0x8e9   :  { %1530 = vsyncpa [#allocation3], 1 }
 0x8ea   :  { %1531 = vsyncpa [#allocation4], 1 }
 0x8eb   :  { %1532 = vsyncpa [#allocation7], 1 }

</bundles_post_ra>
